<compile_context>
chip_gen: v7x
topology: tpu7x:2x2x1
jax: 0.10.0
libtpu: 0.0.40
codegen_flags: <defaults>
</compile_context>

<pallas_src>
import jax
import jax.numpy as jnp
from jax.experimental import pallas as pl
from jax.experimental.pallas import tpu as pltpu


def _conv1x1_kernel(x_ref, w_ref, b_ref, o_ref):
    # x_ref: (P, Cin) f32   w_ref: (Cin, Cout) bf16   b_ref: (1, Cout) f32
    # o_ref: (P, Cout) f32
    x = x_ref[...].astype(w_ref.dtype)          # bf16 cast on VPU (512 B, free)
    acc = jnp.dot(x, w_ref[...],                # canonical [M,K]x[K,N] -> MXU,
                  preferred_element_type=jnp.float32)  # no weight transpose
    o_ref[...] = (acc + b_ref[...]).astype(o_ref.dtype)


def prepare_conv1x1_params(weight_oihw, bias, *, param_dtype=jnp.bfloat16):
    """One-time parameter prep: transpose weight to (Cin, Cout) and cast to bf16.

    Done once at init, NOT per call, so there is no per-call HBM transpose
    round-trip and the per-call weight read is halved.
    """
    Cout, Cin, kh, kw = weight_oihw.shape
    assert kh == 1 and kw == 1
    w_kn = jnp.transpose(weight_oihw.reshape(Cout, Cin), (1, 0)).astype(param_dtype)
    b_2d = bias.reshape(1, Cout).astype(jnp.float32)
    return w_kn, b_2d


def conv2d_1x1(x_nchw, w_kn, b_2d):
    """1x1 conv, stride 1, NCHW in/out, as a single-invocation Pallas matmul."""
    N, Cin, H, W = x_nchw.shape
    Cin_w, Cout = w_kn.shape
    assert Cin == Cin_w
    assert b_2d.shape == (1, Cout)

    P = N * H * W
    # (N, Cin, H, W) -> (N*H*W, Cin).  For H=W=1 this is a pure reshape.
    x2d = jnp.transpose(x_nchw, (0, 2, 3, 1)).reshape(P, Cin)

    x_bytes = jnp.dtype(x_nchw.dtype).itemsize
    w_bytes = jnp.dtype(w_kn.dtype).itemsize
    cost = pl.CostEstimate(
        flops=2 * P * Cin * Cout,
        transcendentals=0,
        bytes_accessed=(P * Cin * x_bytes + Cin * Cout * w_bytes
                        + Cout * 4 + P * Cout * x_bytes),
    )

    out2d = pl.pallas_call(
        _conv1x1_kernel,
        out_shape=jax.ShapeDtypeStruct((P, Cout), x_nchw.dtype),
        # No grid: single kernel invocation, whole (tiny) operands resident in
        # VMEM, no pipelining/double-buffering overhead.
        in_specs=[
            pl.BlockSpec(memory_space=pltpu.MemorySpace.VMEM),  # x  (P, Cin)
            pl.BlockSpec(memory_space=pltpu.MemorySpace.VMEM),  # w  (Cin, Cout)
            pl.BlockSpec(memory_space=pltpu.MemorySpace.VMEM),  # b  (1, Cout)
        ],
        out_specs=pl.BlockSpec(memory_space=pltpu.MemorySpace.VMEM),
        cost_estimate=cost,
    )(x2d, w_kn, b_2d)

    # Back to NCHW: (N*H*W, Cout) -> (N, H, W, Cout) -> (N, Cout, H, W)
    return jnp.transpose(out2d.reshape(N, H, W, Cout), (0, 3, 1, 2))


if __name__ == "__main__":
    key = jax.random.PRNGKey(0)
    k_x, k_w, k_b = jax.random.split(key, 3)

    N, Cin, H, W = 1, 128, 1, 1
    Cout = 3072

    # Deterministic synthetic parameters (same shapes as the torch module).
    x = jax.random.normal(k_x, (N, Cin, H, W), dtype=jnp.float32)
    weight = jax.random.normal(k_w, (Cout, Cin, 1, 1), dtype=jnp.float32) * 0.05
    bias = jax.random.normal(k_b, (Cout,), dtype=jnp.float32) * 0.05

    # One-time parameter prep (transpose + bf16 cast), then the kernel call.
    w_kn, b_2d = prepare_conv1x1_params(weight, bias)
    out = conv2d_1x1(x, w_kn, b_2d)
    out = jax.block_until_ready(out)

    # Correctness checks.
    assert out.shape == (N, Cout, H, W)

    # (a) Against a reference that applies the same bf16 rounding to x and w
    #     (f32 accumulation) -> should match tightly.
    x_bf = x.astype(jnp.bfloat16).astype(jnp.float32)
    w_bf = weight.reshape(Cout, Cin).astype(jnp.bfloat16).astype(jnp.float32)
    ref_bf = (jnp.einsum("nchw,oc->nohw", x_bf, w_bf)
              + bias.reshape(1, Cout, 1, 1))
    assert jnp.allclose(out, ref_bf, atol=2e-3, rtol=2e-3)

    # (b) Against the full-f32 reference with tolerance loosened for the bf16
    #     weight/activation storage (per perf-review recommendation).
    ref_f32 = (jnp.einsum("nchw,oc->nohw", x, weight.reshape(Cout, Cin))
               + bias.reshape(1, Cout, 1, 1))
    assert jnp.allclose(out, ref_f32, atol=5e-2, rtol=5e-2)

    print("KERNEL_OK")
</pallas_src>

<mosaic_0001>
module attributes {stable_mosaic.version = 11 : i64} {
  func.func @_conv1x1_kernel(%arg0: memref<1x128xf32, #tpu.memory_space<vmem>>, %arg1: memref<128x3072xbf16, #tpu.memory_space<vmem>>, %arg2: memref<1x3072xf32, #tpu.memory_space<vmem>>, %arg3: memref<1x3072xf32, #tpu.memory_space<vmem>>) attributes {dimension_semantics = [], scalar_prefetch = 0 : i64, scratch_operands = 0 : i64, tpu.core_type = #tpu.core_type<tc>} {
    %c0 = arith.constant 0 : index
    %c0_0 = arith.constant 0 : index
    %0 = vector.load %arg0[%c0, %c0_0] : memref<1x128xf32, #tpu.memory_space<vmem>>, vector<1x128xf32>
    %1 = arith.truncf %0 : vector<1x128xf32> to vector<1x128xbf16>
    %c0_1 = arith.constant 0 : index
    %c0_2 = arith.constant 0 : index
    %2 = vector.load %arg1[%c0_1, %c0_2] : memref<128x3072xbf16, #tpu.memory_space<vmem>>, vector<128x3072xbf16>
    %cst = arith.constant dense<0.000000e+00> : vector<1x3072xf32>
    %3 = tpu.matmul %1, %2, %cst {dimension_numbers = #tpu.dot_dimension_numbers<[1], [0], [0], [1], [0, 0, 1, 1], [], []>} : vector<1x128xbf16>, vector<128x3072xbf16>, vector<1x3072xf32> -> vector<1x3072xf32>
    %c0_3 = arith.constant 0 : index
    %c0_4 = arith.constant 0 : index
    %4 = vector.load %arg2[%c0_3, %c0_4] : memref<1x3072xf32, #tpu.memory_space<vmem>>, vector<1x3072xf32>
    %5 = arith.addf %3, %4 : vector<1x3072xf32>
    %c0_5 = arith.constant 0 : index
    %c0_6 = arith.constant 0 : index
    %6 = vector.load %arg3[%c0_5, %c0_6] : memref<1x3072xf32, #tpu.memory_space<vmem>>, vector<1x3072xf32>
    tpu.vector_store %arg3[%c0_5, %c0_6], %5 {strides = array<i32>} : memref<1x3072xf32, #tpu.memory_space<vmem>>, vector<1x3072xf32>,
    return
  }
}

</mosaic_0001>

<bundles_post_ra>
// kernel: tpu_custom_call.1
= control target key start
LH: loop header
LB: loop body
LE: loop exit
PB: predicated region body
PF: predicated region fallthrough
CT: control target
= control target key end

     0   :  { %8 = vsyncpa [#allocation3], 0  ;;  %s2474_s0 = inlined_call_operand.hbm [shape: f32[1,128], index: 0, kind: input, shape index: {}]   ;;  %s2475_s1 = inlined_call_operand.hbm [shape: bf16[128,3072], index: 1, kind: input, shape index: {}]   ;;  %s2476_s2 = inlined_call_operand.hbm [shape: f32[1,3072], index: 2, kind: input, shape index: {}]   ;;  %s2477_s3 = inlined_call_operand.hbm [shape: f32[1,3072], index: 3, kind: output, shape index: {}]  }
   0x1   :  { %9 = vsyncpa [#allocation6], 0 }
   0x2   :  { %10 = vsyncpa [#allocation4], 0  ;;  %s2312_s12 = smov [#allocation5]   ;;  %s2218_s16 = scalar_lea.hbm %s2475_s1, 24576 }
   0x3   :  { %s26_s13 = sshll.u32 %s2312_s12, 4  ;;  %p2219_p0 = scmp.ne.s32.totalorder %s2475_s1, %s2218_s16  ;;  %s27_s13 = int_to_ptr.vmem [resolvable:$true] %s26_s13 }
   0x4   :  { %p2222_p1 = scmp.lt.u32.totalorder %s2218_s16, %s2475_s1 }
   0x6   :  { %p2224_p2 = pnand %p2222_p1, %p2219_p0 }
   0x8   :  { %2227 = shalt.err (!%p2224_p2)
}
   0x9   :  { %s2228_s21 = scalar_lea.vmem %s27_s13, 24576  ;;  %p2233_p4 = scmp.lt.s32.totalorder %s27_s13, %s27_s13 }
   0xa   :  { %p2229_p3 = scmp.ne.s32.totalorder %s27_s13, %s2228_s21  ;;  %p2234_p5 = scmp.lt.s32.totalorder %s2228_s21, %s2228_s21 }
   0xc   :  { %p2235_p6 = por %p2234_p5, %p2233_p4 }
   0xe   :  { %p2236_p7 = pnand %p2235_p6, %p2229_p3 }
  0x10   :  { %2239 = shalt.err (!%p2236_p7)
}
  0x11   :  { %s2313_s22 = smov 1536   ;;  %s2314_s23 = smov 96  }
  0x12   :  { %32 = dma.hbm_to_vmem [thread:$0]  %s2475_s1, 24576, %s27_s13, [#allocation6], %s2313_s22, %s2313_s22, %s2314_s23  }
  0x13   :  { %s2315_s26 = smov [#allocation2]   ;;  %s2316_s28 = smov [#allocation7]  }
  0x14   :  { %s17_s27 = sshll.u32 %s2315_s26, 4  ;;  %s39_s29 = sshll.u32 %s2316_s28, 4  ;;  %s18_s27 = int_to_ptr.vmem [resolvable:$true] %s17_s27  ;;  %s40_s29 = int_to_ptr.vmem [resolvable:$true] %s39_s29 }
  0x15   :  { %s2240_s5 = scalar_lea.hbm %s2474_s0, 16 }
  0x16   :  { %p2241_p8 = scmp.ne.s32.totalorder %s2474_s0, %s2240_s5  ;;  %p2244_p9 = scmp.lt.u32.totalorder %s2240_s5, %s2474_s0 }
  0x18   :  { %p2246_p10 = pnand %p2244_p9, %p2241_p8 }
  0x1a   :  { %2249 = shalt.err (!%p2246_p10)
}
  0x1b   :  { %s2250_s1 = scalar_lea.vmem %s18_s27, 16  ;;  %s2254_s10 = scalar_lea.vmem %s18_s27, 32 }
  0x1c   :  { %p2251_p11 = scmp.ne.s32.totalorder %s18_s27, %s2250_s1  ;;  %p2255_p12 = scmp.lt.s32.totalorder %s18_s27, %s18_s27 }
  0x1d   :  { %p2256_p13 = scmp.lt.s32.totalorder %s2254_s10, %s2250_s1 }
  0x1f   :  { %p2257_p0 = por %p2256_p13, %p2255_p12 }
  0x21   :  { %p2258_p1 = pnand %p2257_p0, %p2251_p11 }
  0x23   :  { %2261 = shalt.err (!%p2258_p1)
}
  0x24   :  { %20 = dma.hbm_to_vmem [thread:$0]  %s2474_s0, 16, %s18_s27, [#allocation3]  }
  0x25   :  { %s2262_s15 = scalar_lea.hbm %s2476_s2, 384 }
  0x26   :  { %p2263_p2 = scmp.ne.s32.totalorder %s2476_s2, %s2262_s15  ;;  %p2266_p3 = scmp.lt.u32.totalorder %s2262_s15, %s2476_s2 }
  0x28   :  { %p2268_p4 = pnand %p2266_p3, %p2263_p2 }
  0x2a   :  { %2271 = shalt.err (!%p2268_p4)
}
  0x2b   :  { %s2272_s20 = scalar_lea.vmem %s40_s29, 384  ;;  %p2277_p6 = scmp.lt.s32.totalorder %s40_s29, %s40_s29 }
  0x2c   :  { %p2273_p5 = scmp.ne.s32.totalorder %s40_s29, %s2272_s20  ;;  %p2278_p7 = scmp.lt.s32.totalorder %s2272_s20, %s2272_s20 }
  0x2e   :  { %p2279_p8 = por %p2278_p7, %p2277_p6 }
  0x30   :  { %p2280_p9 = pnand %p2279_p8, %p2273_p5 }
  0x32   :  { %2283 = shalt.err (!%p2280_p9)
}
  0x33   :  { %42 = dma.hbm_to_vmem [thread:$0]  %s2476_s2, 384, %s40_s29, [#allocation6]  }
  0x34   :  { %2306 = dma.done.wait [#allocation3], 16  }
  0x35   :  { %2307 = vsyncadd [#allocation3], 4294967280 }
  0x36   :  { %2308 = dma.done.wait [#allocation6], 24960  }
  0x37   :  { %2309 = vsyncadd [#allocation6], 4294942336  ;;  %v2317_v0 = vmov 0   ;;  %v55_v1 = vld [vmem:[#allocation5] sm:$0xff]  ;;  %v56_v3 = vld [vmem:[#allocation5 + $0x8] sm:$0xff]  ;;  %s2319_s2 = smov [#allocation8]  }
  0x38   :  { %1365 = vmatprep.mubr.bf16.mxu0 %v2317_v0  ;;  %1406 = vmatprep.mubr.bf16.mxu1 %v2317_v0  ;;  %v67_v2 = vld [vmem:[#allocation5 + $0x60] sm:$0xff]  ;;  %v68_v5 = vld [vmem:[#allocation5 + $0x68] sm:$0xff]  ;;  %v57_v63 = vld [vmem:[#allocation5 + $0x10] sm:$0xff]  ;;  %s2008_s22 = sshll.u32 %s2319_s2, 4  ;;  %s2009_s22 = int_to_ptr.vmem [resolvable:$true] %s2008_s22 }
  0x39   :  { %v2019_v4 = vcombine.high %v55_v1, %v67_v2  ;;  %v2018_v6 = vcombine.low %v55_v1, %v67_v2  ;;  %v79_v7 = vld [vmem:[#allocation5 + $0xc0] sm:$0xff]  ;;  %v2021_v9 = vcombine.high %v56_v3, %v68_v5  ;;  %v2020_v10 = vcombine.low %v56_v3, %v68_v5  ;;  %v80_v12 = vld [vmem:[#allocation5 + $0xc8] sm:$0xff]  ;;  %v69_v1 = vld [vmem:[#allocation5 + $0x70] sm:$0xff]  ;;  %s2284_s23 = scalar_lea.vmem %s2009_s22, 384  ;;  %p2289_p11 = scmp.lt.s32.totalorder %s2009_s22, %s2009_s22 }
  0x3a   :  { %v91_v8 = vld [vmem:[#allocation5 + $0x120] sm:$0xff]  ;;  %v92_v13 = vld [vmem:[#allocation5 + $0x128] sm:$0xff]  ;;  %v58_v2 = vld [vmem:[#allocation5 + $0x18] sm:$0xff]  ;;  %p2285_p10 = scmp.ne.s32.totalorder %s2009_s22, %s2284_s23  ;;  %p2290_p12 = scmp.lt.s32.totalorder %s2284_s23, %s2284_s23 }
  0x3b   :  { %v2043_v11 = vcombine.high %v79_v7, %v91_v8  ;;  %v103_v14 = vld [vmem:[#allocation5 + $0x180] sm:$0xff]  ;;  %1333 = vmatprep.subr.bf16.mxu0 %v2019_v4  ;;  %v2045_v15 = vcombine.high %v80_v12, %v92_v13  ;;  %v104_v17 = vld [vmem:[#allocation5 + $0x188] sm:$0xff]  ;;  %1374 = vmatprep.subr.bf16.mxu1 %v2021_v9  ;;  %v2042_v19 = vcombine.low %v79_v7, %v91_v8  ;;  %v70_v3 = vld [vmem:[#allocation5 + $0x78] sm:$0xff] }
  0x3c   :  { %v115_v16 = vld [vmem:[#allocation5 + $0x1e0] sm:$0xff]  ;;  %v116_v18 = vld [vmem:[#allocation5 + $0x1e8] sm:$0xff]  ;;  %1334 = vmatpush1.bf16.msra.mxu0 %v2018_v6  ;;  %1375 = vmatpush1.bf16.msra.mxu1 %v2020_v10  ;;  %v2044_v20 = vcombine.low %v80_v12, %v92_v13  ;;  %v53_v5 = vld [vmem:[#allocation2] sm:$0x1]  ;;  %v2023_v7 = vcombine.high %v57_v63, %v69_v1  ;;  %v2025_v8 = vcombine.high %v58_v2, %v70_v3  ;;  %p2291_p13 = por %p2290_p12, %p2289_p11 }
  0x3d   :  { %1335 = vmatprep.subr.bf16.mxu0 %v2043_v11  ;;  %v2067_v21 = vcombine.high %v103_v14, %v115_v16  ;;  %1376 = vmatprep.subr.bf16.mxu1 %v2045_v15  ;;  %v2069_v22 = vcombine.high %v104_v17, %v116_v18  ;;  %v127_v23 = vld [vmem:[#allocation5 + $0x240] sm:$0xff]  ;;  %v128_v25 = vld [vmem:[#allocation5 + $0x248] sm:$0xff]  ;;  %v2066_v27 = vcombine.low %v103_v14, %v115_v16  ;;  %v81_v9 = vld [vmem:[#allocation5 + $0xd0] sm:$0xff] }
  0x3e   :  { %v139_v24 = vld [vmem:[#allocation5 + $0x2a0] sm:$0xff]  ;;  %v140_v26 = vld [vmem:[#allocation5 + $0x2a8] sm:$0xff]  ;;  %v2068_v28 = vcombine.low %v104_v17, %v116_v18  ;;  %v93_v10 = vld [vmem:[#allocation5 + $0x130] sm:$0xff]  ;;  %v2378_v11 = vpack.c.bf16 %v53_v5, %v53_v5  ;;  %v2022_v14 = vcombine.low %v57_v63, %v69_v1  ;;  %v2024_v15 = vcombine.low %v58_v2, %v70_v3  ;;  %p2292_p0 = pnand %p2291_p13, %p2285_p10 }
  0x3f   :  { %v2091_v29 = vcombine.high %v127_v23, %v139_v24  ;;  %v2093_v30 = vcombine.high %v128_v25, %v140_v26  ;;  %v151_v31 = vld [vmem:[#allocation5 + $0x300] sm:$0xff]  ;;  %v152_v33 = vld [vmem:[#allocation5 + $0x308] sm:$0xff]  ;;  %v2090_v35 = vcombine.low %v127_v23, %v139_v24  ;;  %v2092_v36 = vcombine.low %v128_v25, %v140_v26  ;;  %v82_v12 = vld [vmem:[#allocation5 + $0xd8] sm:$0xff] }
  0x40   :  { %1336 = vmatpush1.bf16.msra.mxu0 %v2042_v19  ;;  %1377 = vmatpush1.bf16.msra.mxu1 %v2044_v20  ;;  %v163_v32 = vld [vmem:[#allocation5 + $0x360] sm:$0xff]  ;;  %v164_v34 = vld [vmem:[#allocation5 + $0x368] sm:$0xff]  ;;  %v94_v13 = vld [vmem:[#allocation5 + $0x138] sm:$0xff]  ;;  %v2047_v16 = vcombine.high %v81_v9, %v93_v10 }
  0x41   :  { %1337 = vmatprep.subr.bf16.mxu0 %v2067_v21  ;;  %1378 = vmatprep.subr.bf16.mxu1 %v2069_v22  ;;  %v2115_v37 = vcombine.high %v151_v31, %v163_v32  ;;  %v2117_v38 = vcombine.high %v152_v33, %v164_v34  ;;  %v175_v39 = vld [vmem:[#allocation5 + $0x3c0] sm:$0xff]  ;;  %v176_v41 = vld [vmem:[#allocation5 + $0x3c8] sm:$0xff]  ;;  %v2114_v43 = vcombine.low %v151_v31, %v163_v32  ;;  %v105_v18 = vld [vmem:[#allocation5 + $0x190] sm:$0xff] }
  0x42   :  { %v187_v40 = vld [vmem:[#allocation5 + $0x420] sm:$0xff]  ;;  %v188_v42 = vld [vmem:[#allocation5 + $0x428] sm:$0xff]  ;;  %v2116_v44 = vcombine.low %v152_v33, %v164_v34  ;;  %v2049_v17 = vcombine.high %v82_v12, %v94_v13  ;;  %v117_v19 = vld [vmem:[#allocation5 + $0x1f0] sm:$0xff]  ;;  %v2046_v22 = vcombine.low %v81_v9, %v93_v10  ;;  %v2048_v23 = vcombine.low %v82_v12, %v94_v13 }
  0x43   :  { %v2139_v45 = vcombine.high %v175_v39, %v187_v40  ;;  %v2141_v46 = vcombine.high %v176_v41, %v188_v42  ;;  %v199_v47 = vld [vmem:[#allocation5 + $0x480] sm:$0xff]  ;;  %v200_v49 = vld [vmem:[#allocation5 + $0x488] sm:$0xff]  ;;  %v2138_v51 = vcombine.low %v175_v39, %v187_v40  ;;  %v2140_v52 = vcombine.low %v176_v41, %v188_v42  ;;  %v106_v20 = vld [vmem:[#allocation5 + $0x198] sm:$0xff] }
  0x44   :  { %1338 = vmatpush1.bf16.msra.mxu0 %v2066_v27  ;;  %1379 = vmatpush1.bf16.msra.mxu1 %v2068_v28  ;;  %v211_v48 = vld [vmem:[#allocation5 + $0x4e0] sm:$0xff]  ;;  %v212_v50 = vld [vmem:[#allocation5 + $0x4e8] sm:$0xff]  ;;  %v118_v21 = vld [vmem:[#allocation5 + $0x1f8] sm:$0xff]  ;;  %v2071_v24 = vcombine.high %v105_v18, %v117_v19 }
  0x45   :  { %1339 = vmatprep.subr.bf16.mxu0 %v2091_v29  ;;  %1380 = vmatprep.subr.bf16.mxu1 %v2093_v30  ;;  %v2163_v53 = vcombine.high %v199_v47, %v211_v48  ;;  %v2165_v54 = vcombine.high %v200_v49, %v212_v50  ;;  %v223_v55 = vld [vmem:[#allocation5 + $0x540] sm:$0xff]  ;;  %v224_v57 = vld [vmem:[#allocation5 + $0x548] sm:$0xff]  ;;  %v2162_v59 = vcombine.low %v199_v47, %v211_v48  ;;  %v129_v26 = vld [vmem:[#allocation5 + $0x250] sm:$0xff] }
  0x46   :  { %v235_v56 = vld [vmem:[#allocation5 + $0x5a0] sm:$0xff]  ;;  %v236_v58 = vld [vmem:[#allocation5 + $0x5a8] sm:$0xff]  ;;  %v2164_v60 = vcombine.low %v200_v49, %v212_v50  ;;  %v2073_v25 = vcombine.high %v106_v20, %v118_v21  ;;  %v141_v27 = vld [vmem:[#allocation5 + $0x2b0] sm:$0xff]  ;;  %v2070_v30 = vcombine.low %v105_v18, %v117_v19  ;;  %v2072_v31 = vcombine.low %v106_v20, %v118_v21 }
  0x47   :  { %v2187_v61 = vcombine.high %v223_v55, %v235_v56  ;;  %v2189_v62 = vcombine.high %v224_v57, %v236_v58  ;;  %v2186_v4 = vcombine.low %v223_v55, %v235_v56  ;;  %v2188_v6 = vcombine.low %v224_v57, %v236_v58  ;;  %v130_v28 = vld [vmem:[#allocation5 + $0x258] sm:$0xff]  ;;  %v153_v34 = vld [vmem:[#allocation5 + $0x310] sm:$0xff]  ;;  %v59_v3 = vld [vmem:[#allocation5 + $0x20] sm:$0xff] }
  0x48   :  { %1340 = vmatpush1.bf16.msra.mxu0 %v2090_v35  ;;  %1381 = vmatpush1.bf16.msra.mxu1 %v2092_v36  ;;  %v142_v29 = vld [vmem:[#allocation5 + $0x2b8] sm:$0xff]  ;;  %v2095_v32 = vcombine.high %v129_v26, %v141_v27  ;;  %v165_v35 = vld [vmem:[#allocation5 + $0x370] sm:$0xff]  ;;  %v60_v5 = vld [vmem:[#allocation5 + $0x28] sm:$0xff] }
  0x49   :  { %1341 = vmatprep.subr.bf16.mxu0 %v2115_v37  ;;  %1382 = vmatprep.subr.bf16.mxu1 %v2117_v38  ;;  %v2097_v33 = vcombine.high %v130_v28, %v142_v29  ;;  %v154_v36 = vld [vmem:[#allocation5 + $0x318] sm:$0xff]  ;;  %v2094_v38 = vcombine.low %v129_v26, %v141_v27  ;;  %v2096_v39 = vcombine.low %v130_v28, %v142_v29  ;;  %v177_v42 = vld [vmem:[#allocation5 + $0x3d0] sm:$0xff]  ;;  %v83_v12 = vld [vmem:[#allocation5 + $0xe0] sm:$0xff] }
  0x4a   :  { %v166_v37 = vld [vmem:[#allocation5 + $0x378] sm:$0xff]  ;;  %v2119_v40 = vcombine.high %v153_v34, %v165_v35  ;;  %v201_v50 = vld [vmem:[#allocation5 + $0x490] sm:$0xff]  ;;  %v95_v13 = vld [vmem:[#allocation5 + $0x140] sm:$0xff] }
  0x4b   :  { %v2121_v41 = vcombine.high %v154_v36, %v166_v37  ;;  %v2120_v47 = vcombine.low %v154_v36, %v166_v37  ;;  %v225_v58 = vld [vmem:[#allocation5 + $0x550] sm:$0xff]  ;;  %v2051_v18 = vcombine.high %v83_v12, %v95_v13  ;;  %v107_v20 = vld [vmem:[#allocation5 + $0x1a0] sm:$0xff] }
  0x4c   :  { %1342 = vmatpush1.bf16.msra.mxu0 %v2114_v43  ;;  %1383 = vmatpush1.bf16.msra.mxu1 %v2116_v44  ;;  %v189_v43 = vld [vmem:[#allocation5 + $0x430] sm:$0xff]  ;;  %v178_v44 = vld [vmem:[#allocation5 + $0x3d8] sm:$0xff]  ;;  %v119_v21 = vld [vmem:[#allocation5 + $0x200] sm:$0xff] }
  0x4d   :  { %1343 = vmatprep.subr.bf16.mxu0 %v2139_v45  ;;  %1384 = vmatprep.subr.bf16.mxu1 %v2141_v46  ;;  %v190_v45 = vld [vmem:[#allocation5 + $0x438] sm:$0xff]  ;;  %v2118_v46 = vcombine.low %v153_v34, %v165_v35  ;;  %v2143_v48 = vcombine.high %v177_v42, %v189_v43  ;;  %v2075_v26 = vcombine.high %v107_v20, %v119_v21  ;;  %v131_v28 = vld [vmem:[#allocation5 + $0x260] sm:$0xff] }
  0x4e   :  { %v2145_v49 = vcombine.high %v178_v44, %v190_v45  ;;  %v2144_v55 = vcombine.low %v178_v44, %v190_v45  ;;  %v143_v29 = vld [vmem:[#allocation5 + $0x2c0] sm:$0xff] }
  0x4f   :  { %v2099_v34 = vcombine.high %v131_v28, %v143_v29  ;;  %v155_v36 = vld [vmem:[#allocation5 + $0x320] sm:$0xff] }
  0x50   :  { %1344 = vmatpush1.bf16.msra.mxu0 %v2138_v51  ;;  %1385 = vmatpush1.bf16.msra.mxu1 %v2140_v52  ;;  %v213_v51 = vld [vmem:[#allocation5 + $0x4f0] sm:$0xff]  ;;  %v202_v52 = vld [vmem:[#allocation5 + $0x498] sm:$0xff]  ;;  %v167_v37 = vld [vmem:[#allocation5 + $0x380] sm:$0xff] }
  0x51   :  { %1345 = vmatprep.subr.bf16.mxu0 %v2163_v53  ;;  %1386 = vmatprep.subr.bf16.mxu1 %v2165_v54  ;;  %v214_v53 = vld [vmem:[#allocation5 + $0x4f8] sm:$0xff]  ;;  %v2142_v54 = vcombine.low %v177_v42, %v189_v43  ;;  %v2167_v56 = vcombine.high %v201_v50, %v213_v51  ;;  %v2123_v42 = vcombine.high %v155_v36, %v167_v37  ;;  %v179_v44 = vld [vmem:[#allocation5 + $0x3e0] sm:$0xff] }
  0x52   :  { %v2169_v57 = vcombine.high %v202_v52, %v214_v53  ;;  %v2168_v63 = vcombine.low %v202_v52, %v214_v53  ;;  %v191_v45 = vld [vmem:[#allocation5 + $0x440] sm:$0xff] }
  0x53   :  { %v203_v52 = vld [vmem:[#allocation5 + $0x4a0] sm:$0xff] }
  0x54   :  { %1346 = vmatpush1.bf16.msra.mxu0 %v2162_v59  ;;  %1387 = vmatpush1.bf16.msra.mxu1 %v2164_v60  ;;  %v237_v59 = vld [vmem:[#allocation5 + $0x5b0] sm:$0xff]  ;;  %v226_v60 = vld [vmem:[#allocation5 + $0x558] sm:$0xff]  ;;  %v215_v53 = vld [vmem:[#allocation5 + $0x500] sm:$0xff] }
  0x55   :  { %1347 = vmatprep.subr.bf16.mxu0 %v2187_v61  ;;  %1388 = vmatprep.subr.bf16.mxu1 %v2189_v62  ;;  %v238_v61 = vld [vmem:[#allocation5 + $0x5b8] sm:$0xff]  ;;  %v2166_v62 = vcombine.low %v201_v50, %v213_v51  ;;  %v2191_v1 = vcombine.high %v225_v58, %v237_v59  ;;  %v2147_v50 = vcombine.high %v179_v44, %v191_v45 }
  0x56   :  { %v2193_v2 = vcombine.high %v226_v60, %v238_v61 }
  0x58   :  { %1348 = vmatpush1.bf16.msra.mxu0 %v2186_v4  ;;  %1389 = vmatpush1.bf16.msra.mxu1 %v2188_v6  ;;  %v71_v4 = vld [vmem:[#allocation5 + $0x80] sm:$0xff]  ;;  %v72_v6 = vld [vmem:[#allocation5 + $0x88] sm:$0xff] }
  0x59   :  { %1415 = vmatprep.subr.bf16.mxu0 %v2023_v7  ;;  %1456 = vmatprep.subr.bf16.mxu1 %v2025_v8  ;;  %v2190_v7 = vcombine.low %v225_v58, %v237_v59  ;;  %v2192_v8 = vcombine.low %v226_v60, %v238_v61  ;;  %v2027_v9 = vcombine.high %v59_v3, %v71_v4  ;;  %v227_v60 = vld [vmem:[#allocation5 + $0x560] sm:$0xff] }
  0x5a   :  { %v2029_v10 = vcombine.high %v60_v5, %v72_v6  ;;  %v2171_v58 = vcombine.high %v203_v52, %v215_v53  ;;  %v239_v61 = vld [vmem:[#allocation5 + $0x5c0] sm:$0xff] }
  0x5b   :  { %1366 = vmatmul.mubr.bf16.vlgmr.msra.gmra.mrb[0].mxu0 %v2378_v11  ;;  %1407 = vmatmul.mubr.bf16.vlgmr.msra.gmra.mrb[0].mxu1 %v2378_v11 }
  0x5c   :  { %1416 = vmatpush1.bf16.msra.mxu0 %v2022_v14  ;;  %1457 = vmatpush1.bf16.msra.mxu1 %v2024_v15  ;;  %v84_v14 = vld [vmem:[#allocation5 + $0xe8] sm:$0xff] }
  0x5d   :  { %1417 = vmatprep.subr.bf16.mxu0 %v2047_v16  ;;  %1458 = vmatprep.subr.bf16.mxu1 %v2049_v17  ;;  %v96_v15 = vld [vmem:[#allocation5 + $0x148] sm:$0xff]  ;;  %v2026_v16 = vcombine.low %v59_v3, %v71_v4  ;;  %v2028_v17 = vcombine.low %v60_v5, %v72_v6  ;;  %v2195_v3 = vcombine.high %v227_v60, %v239_v61  ;;  %v61_v5 = vld [vmem:[#allocation5 + $0x30] sm:$0xff] }
  0x5e   :  { %1447 = vmatprep.mubr.bf16.mxu0 %v2317_v0  ;;  %1488 = vmatprep.mubr.bf16.mxu1 %v2317_v0  ;;  %v2053_v19 = vcombine.high %v84_v14, %v96_v15  ;;  %v73_v6 = vld [vmem:[#allocation5 + $0x90] sm:$0xff] }
  0x60   :  { %1418 = vmatpush1.bf16.msra.mxu0 %v2046_v22  ;;  %1459 = vmatpush1.bf16.msra.mxu1 %v2048_v23  ;;  %v108_v22 = vld [vmem:[#allocation5 + $0x1a8] sm:$0xff] }
  0x61   :  { %1419 = vmatprep.subr.bf16.mxu0 %v2071_v24  ;;  %1460 = vmatprep.subr.bf16.mxu1 %v2073_v25  ;;  %v120_v23 = vld [vmem:[#allocation5 + $0x208] sm:$0xff]  ;;  %v2050_v24 = vcombine.low %v83_v12, %v95_v13  ;;  %v2052_v25 = vcombine.low %v84_v14, %v96_v15  ;;  %v2031_v12 = vcombine.high %v61_v5, %v73_v6  ;;  %v85_v14 = vld [vmem:[#allocation5 + $0xf0] sm:$0xff] }
  0x62   :  { %v2077_v27 = vcombine.high %v108_v22, %v120_v23  ;;  %v97_v15 = vld [vmem:[#allocation5 + $0x150] sm:$0xff] }
  0x64   :  { %1420 = vmatpush1.bf16.msra.mxu0 %v2070_v30  ;;  %1461 = vmatpush1.bf16.msra.mxu1 %v2072_v31  ;;  %v132_v30 = vld [vmem:[#allocation5 + $0x268] sm:$0xff] }
  0x65   :  { %1421 = vmatprep.subr.bf16.mxu0 %v2095_v32  ;;  %1462 = vmatprep.subr.bf16.mxu1 %v2097_v33  ;;  %v144_v31 = vld [vmem:[#allocation5 + $0x2c8] sm:$0xff]  ;;  %v2074_v32 = vcombine.low %v107_v20, %v119_v21  ;;  %v2076_v33 = vcombine.low %v108_v22, %v120_v23  ;;  %v2055_v20 = vcombine.high %v85_v14, %v97_v15  ;;  %v109_v22 = vld [vmem:[#allocation5 + $0x1b0] sm:$0xff] }
  0x66   :  { %v2101_v35 = vcombine.high %v132_v30, %v144_v31  ;;  %v121_v23 = vld [vmem:[#allocation5 + $0x210] sm:$0xff] }
  0x68   :  { %1422 = vmatpush1.bf16.msra.mxu0 %v2094_v38  ;;  %1463 = vmatpush1.bf16.msra.mxu1 %v2096_v39  ;;  %v156_v38 = vld [vmem:[#allocation5 + $0x328] sm:$0xff] }
  0x69   :  { %1423 = vmatprep.subr.bf16.mxu0 %v2119_v40  ;;  %1464 = vmatprep.subr.bf16.mxu1 %v2121_v41  ;;  %v168_v39 = vld [vmem:[#allocation5 + $0x388] sm:$0xff]  ;;  %v2098_v40 = vcombine.low %v131_v28, %v143_v29  ;;  %v2100_v41 = vcombine.low %v132_v30, %v144_v31  ;;  %v2079_v28 = vcombine.high %v109_v22, %v121_v23  ;;  %v133_v30 = vld [vmem:[#allocation5 + $0x270] sm:$0xff] }
  0x6a   :  { %v2125_v43 = vcombine.high %v156_v38, %v168_v39  ;;  %v145_v31 = vld [vmem:[#allocation5 + $0x2d0] sm:$0xff] }
  0x6c   :  { %1424 = vmatpush1.bf16.msra.mxu0 %v2118_v46  ;;  %1465 = vmatpush1.bf16.msra.mxu1 %v2120_v47  ;;  %v180_v46 = vld [vmem:[#allocation5 + $0x3e8] sm:$0xff] }
  0x6d   :  { %1425 = vmatprep.subr.bf16.mxu0 %v2143_v48  ;;  %1466 = vmatprep.subr.bf16.mxu1 %v2145_v49  ;;  %v192_v47 = vld [vmem:[#allocation5 + $0x448] sm:$0xff]  ;;  %v2122_v48 = vcombine.low %v155_v36, %v167_v37  ;;  %v2124_v49 = vcombine.low %v156_v38, %v168_v39  ;;  %v2103_v36 = vcombine.high %v133_v30, %v145_v31  ;;  %v157_v38 = vld [vmem:[#allocation5 + $0x330] sm:$0xff] }
  0x6e   :  { %v2149_v51 = vcombine.high %v180_v46, %v192_v47  ;;  %v169_v39 = vld [vmem:[#allocation5 + $0x390] sm:$0xff] }
  0x70   :  { %1426 = vmatpush1.bf16.msra.mxu0 %v2142_v54  ;;  %1467 = vmatpush1.bf16.msra.mxu1 %v2144_v55  ;;  %v204_v54 = vld [vmem:[#allocation5 + $0x4a8] sm:$0xff] }
  0x71   :  { %1427 = vmatprep.subr.bf16.mxu0 %v2167_v56  ;;  %1468 = vmatprep.subr.bf16.mxu1 %v2169_v57  ;;  %v216_v55 = vld [vmem:[#allocation5 + $0x508] sm:$0xff]  ;;  %v2146_v56 = vcombine.low %v179_v44, %v191_v45  ;;  %v2148_v57 = vcombine.low %v180_v46, %v192_v47  ;;  %v2127_v44 = vcombine.high %v157_v38, %v169_v39  ;;  %v181_v46 = vld [vmem:[#allocation5 + $0x3f0] sm:$0xff] }
  0x72   :  { %v2173_v59 = vcombine.high %v204_v54, %v216_v55  ;;  %v193_v47 = vld [vmem:[#allocation5 + $0x450] sm:$0xff] }
  0x74   :  { %1428 = vmatpush1.bf16.msra.mxu0 %v2166_v62  ;;  %1469 = vmatpush1.bf16.msra.mxu1 %v2168_v63  ;;  %v228_v62 = vld [vmem:[#allocation5 + $0x568] sm:$0xff] }
  0x75   :  { %1429 = vmatprep.subr.bf16.mxu0 %v2191_v1  ;;  %1470 = vmatprep.subr.bf16.mxu1 %v2193_v2  ;;  %v240_v63 = vld [vmem:[#allocation5 + $0x5c8] sm:$0xff]  ;;  %v2170_v1 = vcombine.low %v203_v52, %v215_v53  ;;  %v2172_v2 = vcombine.low %v204_v54, %v216_v55  ;;  %v2151_v52 = vcombine.high %v181_v46, %v193_v47  ;;  %v205_v54 = vld [vmem:[#allocation5 + $0x4b0] sm:$0xff] }
  0x76   :  { %v2197_v4 = vcombine.high %v228_v62, %v240_v63  ;;  %v217_v55 = vld [vmem:[#allocation5 + $0x510] sm:$0xff] }
  0x78   :  { %1430 = vmatpush1.bf16.msra.mxu0 %v2190_v7  ;;  %1471 = vmatpush1.bf16.msra.mxu1 %v2192_v8  ;;  %v62_v7 = vld [vmem:[#allocation5 + $0x38] sm:$0xff] }
  0x79   :  { %1497 = vmatprep.subr.bf16.mxu0 %v2027_v9  ;;  %1538 = vmatprep.subr.bf16.mxu1 %v2029_v10  ;;  %v74_v8 = vld [vmem:[#allocation5 + $0x98] sm:$0xff]  ;;  %v2194_v9 = vcombine.low %v227_v60, %v239_v61  ;;  %v2196_v10 = vcombine.low %v228_v62, %v240_v63  ;;  %v2175_v60 = vcombine.high %v205_v54, %v217_v55  ;;  %v229_v62 = vld [vmem:[#allocation5 + $0x570] sm:$0xff] }
  0x7a   :  { %v2033_v13 = vcombine.high %v62_v7, %v74_v8  ;;  %v241_v63 = vld [vmem:[#allocation5 + $0x5d0] sm:$0xff] }
  0x7b   :  { %1448 = vmatmul.mubr.bf16.vlgmr.msra.gmra.mrb[4].mxu0 %v2378_v11  ;;  %1489 = vmatmul.mubr.bf16.vlgmr.msra.gmra.mrb[4].mxu1 %v2378_v11 }
  0x7c   :  { %1498 = vmatpush1.bf16.msra.mxu0 %v2026_v16  ;;  %1539 = vmatpush1.bf16.msra.mxu1 %v2028_v17  ;;  %v86_v16 = vld [vmem:[#allocation5 + $0xf8] sm:$0xff] }
  0x7d   :  { %1499 = vmatprep.subr.bf16.mxu0 %v2051_v18  ;;  %1540 = vmatprep.subr.bf16.mxu1 %v2053_v19  ;;  %v98_v17 = vld [vmem:[#allocation5 + $0x158] sm:$0xff]  ;;  %v2030_v18 = vcombine.low %v61_v5, %v73_v6  ;;  %v2032_v19 = vcombine.low %v62_v7, %v74_v8  ;;  %v2199_v5 = vcombine.high %v229_v62, %v241_v63  ;;  %v63_v7 = vld [vmem:[#allocation5 + $0x40] sm:$0xff] }
  0x7e   :  { %1529 = vmatprep.mubr.bf16.mxu0 %v2317_v0  ;;  %1570 = vmatprep.mubr.bf16.mxu1 %v2317_v0  ;;  %v2057_v21 = vcombine.high %v86_v16, %v98_v17  ;;  %v75_v8 = vld [vmem:[#allocation5 + $0xa0] sm:$0xff] }
  0x80   :  { %1500 = vmatpush1.bf16.msra.mxu0 %v2050_v24  ;;  %1541 = vmatpush1.bf16.msra.mxu1 %v2052_v25  ;;  %v110_v24 = vld [vmem:[#allocation5 + $0x1b8] sm:$0xff] }
  0x81   :  { %1501 = vmatprep.subr.bf16.mxu0 %v2075_v26  ;;  %1542 = vmatprep.subr.bf16.mxu1 %v2077_v27  ;;  %v122_v25 = vld [vmem:[#allocation5 + $0x218] sm:$0xff]  ;;  %v2054_v26 = vcombine.low %v85_v14, %v97_v15  ;;  %v2056_v27 = vcombine.low %v86_v16, %v98_v17  ;;  %v2035_v14 = vcombine.high %v63_v7, %v75_v8  ;;  %v87_v16 = vld [vmem:[#allocation5 + $0x100] sm:$0xff] }
  0x82   :  { %v2081_v29 = vcombine.high %v110_v24, %v122_v25  ;;  %v99_v17 = vld [vmem:[#allocation5 + $0x160] sm:$0xff] }
  0x84   :  { %1502 = vmatpush1.bf16.msra.mxu0 %v2074_v32  ;;  %1543 = vmatpush1.bf16.msra.mxu1 %v2076_v33  ;;  %v134_v32 = vld [vmem:[#allocation5 + $0x278] sm:$0xff] }
  0x85   :  { %1503 = vmatprep.subr.bf16.mxu0 %v2099_v34  ;;  %1544 = vmatprep.subr.bf16.mxu1 %v2101_v35  ;;  %v146_v33 = vld [vmem:[#allocation5 + $0x2d8] sm:$0xff]  ;;  %v2078_v34 = vcombine.low %v109_v22, %v121_v23  ;;  %v2080_v35 = vcombine.low %v110_v24, %v122_v25  ;;  %v2059_v22 = vcombine.high %v87_v16, %v99_v17  ;;  %v111_v24 = vld [vmem:[#allocation5 + $0x1c0] sm:$0xff] }
  0x86   :  { %v2105_v37 = vcombine.high %v134_v32, %v146_v33  ;;  %v123_v25 = vld [vmem:[#allocation5 + $0x220] sm:$0xff] }
  0x88   :  { %1504 = vmatpush1.bf16.msra.mxu0 %v2098_v40  ;;  %1545 = vmatpush1.bf16.msra.mxu1 %v2100_v41  ;;  %v158_v40 = vld [vmem:[#allocation5 + $0x338] sm:$0xff] }
  0x89   :  { %1505 = vmatprep.subr.bf16.mxu0 %v2123_v42  ;;  %1546 = vmatprep.subr.bf16.mxu1 %v2125_v43  ;;  %v170_v41 = vld [vmem:[#allocation5 + $0x398] sm:$0xff]  ;;  %v2102_v42 = vcombine.low %v133_v30, %v145_v31  ;;  %v2104_v43 = vcombine.low %v134_v32, %v146_v33  ;;  %v2083_v30 = vcombine.high %v111_v24, %v123_v25  ;;  %v135_v32 = vld [vmem:[#allocation5 + $0x280] sm:$0xff] }
  0x8a   :  { %v2129_v45 = vcombine.high %v158_v40, %v170_v41  ;;  %v147_v33 = vld [vmem:[#allocation5 + $0x2e0] sm:$0xff] }
  0x8c   :  { %1506 = vmatpush1.bf16.msra.mxu0 %v2122_v48  ;;  %1547 = vmatpush1.bf16.msra.mxu1 %v2124_v49  ;;  %v182_v48 = vld [vmem:[#allocation5 + $0x3f8] sm:$0xff] }
  0x8d   :  { %1507 = vmatprep.subr.bf16.mxu0 %v2147_v50  ;;  %1548 = vmatprep.subr.bf16.mxu1 %v2149_v51  ;;  %v194_v49 = vld [vmem:[#allocation5 + $0x458] sm:$0xff]  ;;  %v2126_v50 = vcombine.low %v157_v38, %v169_v39  ;;  %v2128_v51 = vcombine.low %v158_v40, %v170_v41  ;;  %v2107_v38 = vcombine.high %v135_v32, %v147_v33  ;;  %v159_v40 = vld [vmem:[#allocation5 + $0x340] sm:$0xff] }
  0x8e   :  { %v2153_v53 = vcombine.high %v182_v48, %v194_v49  ;;  %v171_v41 = vld [vmem:[#allocation5 + $0x3a0] sm:$0xff] }
  0x90   :  { %1508 = vmatpush1.bf16.msra.mxu0 %v2146_v56  ;;  %1549 = vmatpush1.bf16.msra.mxu1 %v2148_v57  ;;  %v206_v56 = vld [vmem:[#allocation5 + $0x4b8] sm:$0xff] }
  0x91   :  { %1509 = vmatprep.subr.bf16.mxu0 %v2171_v58  ;;  %1550 = vmatprep.subr.bf16.mxu1 %v2173_v59  ;;  %v218_v57 = vld [vmem:[#allocation5 + $0x518] sm:$0xff]  ;;  %v2150_v58 = vcombine.low %v181_v46, %v193_v47  ;;  %v2152_v59 = vcombine.low %v182_v48, %v194_v49  ;;  %v2131_v46 = vcombine.high %v159_v40, %v171_v41  ;;  %v183_v48 = vld [vmem:[#allocation5 + $0x400] sm:$0xff] }
  0x92   :  { %v2177_v61 = vcombine.high %v206_v56, %v218_v57  ;;  %v195_v49 = vld [vmem:[#allocation5 + $0x460] sm:$0xff] }
  0x94   :  { %1510 = vmatpush1.bf16.msra.mxu0 %v2170_v1  ;;  %1551 = vmatpush1.bf16.msra.mxu1 %v2172_v2  ;;  %v230_v1 = vld [vmem:[#allocation5 + $0x578] sm:$0xff] }
  0x95   :  { %1511 = vmatprep.subr.bf16.mxu0 %v2195_v3  ;;  %1552 = vmatprep.subr.bf16.mxu1 %v2197_v4  ;;  %v242_v2 = vld [vmem:[#allocation5 + $0x5d8] sm:$0xff]  ;;  %v2174_v3 = vcombine.low %v205_v54, %v217_v55  ;;  %v2176_v4 = vcombine.low %v206_v56, %v218_v57  ;;  %v2155_v54 = vcombine.high %v183_v48, %v195_v49  ;;  %v207_v56 = vld [vmem:[#allocation5 + $0x4c0] sm:$0xff] }
  0x96   :  { %v2201_v6 = vcombine.high %v230_v1, %v242_v2  ;;  %v219_v57 = vld [vmem:[#allocation5 + $0x520] sm:$0xff] }
  0x98   :  { %1512 = vmatpush1.bf16.msra.mxu0 %v2194_v9  ;;  %1553 = vmatpush1.bf16.msra.mxu1 %v2196_v10  ;;  %v64_v9 = vld [vmem:[#allocation5 + $0x48] sm:$0xff] }
  0x99   :  { %1579 = vmatprep.subr.bf16.mxu0 %v2031_v12  ;;  %1620 = vmatprep.subr.bf16.mxu1 %v2033_v13  ;;  %v76_v10 = vld [vmem:[#allocation5 + $0xa8] sm:$0xff]  ;;  %v2198_v12 = vcombine.low %v229_v62, %v241_v63  ;;  %v2200_v13 = vcombine.low %v230_v1, %v242_v2  ;;  %v2179_v62 = vcombine.high %v207_v56, %v219_v57  ;;  %v231_v1 = vld [vmem:[#allocation5 + $0x580] sm:$0xff] }
  0x9a   :  { %v2037_v15 = vcombine.high %v64_v9, %v76_v10  ;;  %v243_v2 = vld [vmem:[#allocation5 + $0x5e0] sm:$0xff] }
  0x9b   :  { %1530 = vmatmul.mubr.bf16.vlgmr.msra.gmra.mrb[8].mxu0 %v2378_v11  ;;  %1571 = vmatmul.mubr.bf16.vlgmr.msra.gmra.mrb[8].mxu1 %v2378_v11 }
  0x9c   :  { %1580 = vmatpush1.bf16.msra.mxu0 %v2030_v18  ;;  %1621 = vmatpush1.bf16.msra.mxu1 %v2032_v19  ;;  %v88_v18 = vld [vmem:[#allocation5 + $0x108] sm:$0xff] }
  0x9d   :  { %1581 = vmatprep.subr.bf16.mxu0 %v2055_v20  ;;  %1622 = vmatprep.subr.bf16.mxu1 %v2057_v21  ;;  %v100_v19 = vld [vmem:[#allocation5 + $0x168] sm:$0xff]  ;;  %v2034_v20 = vcombine.low %v63_v7, %v75_v8  ;;  %v2036_v21 = vcombine.low %v64_v9, %v76_v10  ;;  %v2203_v7 = vcombine.high %v231_v1, %v243_v2  ;;  %v65_v9 = vld [vmem:[#allocation5 + $0x50] sm:$0xff] }
  0x9e   :  { %1611 = vmatprep.mubr.bf16.mxu0 %v2317_v0  ;;  %1652 = vmatprep.mubr.bf16.mxu1 %v2317_v0  ;;  %v2061_v23 = vcombine.high %v88_v18, %v100_v19  ;;  %v77_v10 = vld [vmem:[#allocation5 + $0xb0] sm:$0xff] }
  0xa0   :  { %1582 = vmatpush1.bf16.msra.mxu0 %v2054_v26  ;;  %1623 = vmatpush1.bf16.msra.mxu1 %v2056_v27  ;;  %v112_v26 = vld [vmem:[#allocation5 + $0x1c8] sm:$0xff] }
  0xa1   :  { %1583 = vmatprep.subr.bf16.mxu0 %v2079_v28  ;;  %1624 = vmatprep.subr.bf16.mxu1 %v2081_v29  ;;  %v124_v27 = vld [vmem:[#allocation5 + $0x228] sm:$0xff]  ;;  %v2058_v28 = vcombine.low %v87_v16, %v99_v17  ;;  %v2060_v29 = vcombine.low %v88_v18, %v100_v19  ;;  %v2039_v16 = vcombine.high %v65_v9, %v77_v10  ;;  %v89_v18 = vld [vmem:[#allocation5 + $0x110] sm:$0xff] }
  0xa2   :  { %v2085_v31 = vcombine.high %v112_v26, %v124_v27  ;;  %v101_v19 = vld [vmem:[#allocation5 + $0x170] sm:$0xff] }
  0xa4   :  { %1584 = vmatpush1.bf16.msra.mxu0 %v2078_v34  ;;  %1625 = vmatpush1.bf16.msra.mxu1 %v2080_v35  ;;  %v136_v34 = vld [vmem:[#allocation5 + $0x288] sm:$0xff] }
  0xa5   :  { %1585 = vmatprep.subr.bf16.mxu0 %v2103_v36  ;;  %1626 = vmatprep.subr.bf16.mxu1 %v2105_v37  ;;  %v148_v35 = vld [vmem:[#allocation5 + $0x2e8] sm:$0xff]  ;;  %v2082_v36 = vcombine.low %v111_v24, %v123_v25  ;;  %v2084_v37 = vcombine.low %v112_v26, %v124_v27  ;;  %v2063_v24 = vcombine.high %v89_v18, %v101_v19  ;;  %v113_v26 = vld [vmem:[#allocation5 + $0x1d0] sm:$0xff] }
  0xa6   :  { %v2109_v39 = vcombine.high %v136_v34, %v148_v35  ;;  %v125_v27 = vld [vmem:[#allocation5 + $0x230] sm:$0xff] }
  0xa8   :  { %1586 = vmatpush1.bf16.msra.mxu0 %v2102_v42  ;;  %1627 = vmatpush1.bf16.msra.mxu1 %v2104_v43  ;;  %v160_v42 = vld [vmem:[#allocation5 + $0x348] sm:$0xff] }
  0xa9   :  { %1587 = vmatprep.subr.bf16.mxu0 %v2127_v44  ;;  %1628 = vmatprep.subr.bf16.mxu1 %v2129_v45  ;;  %v172_v43 = vld [vmem:[#allocation5 + $0x3a8] sm:$0xff]  ;;  %v2106_v44 = vcombine.low %v135_v32, %v147_v33  ;;  %v2108_v45 = vcombine.low %v136_v34, %v148_v35  ;;  %v2087_v32 = vcombine.high %v113_v26, %v125_v27  ;;  %v137_v34 = vld [vmem:[#allocation5 + $0x290] sm:$0xff] }
  0xaa   :  { %v2133_v47 = vcombine.high %v160_v42, %v172_v43  ;;  %v149_v35 = vld [vmem:[#allocation5 + $0x2f0] sm:$0xff] }
  0xac   :  { %1588 = vmatpush1.bf16.msra.mxu0 %v2126_v50  ;;  %1629 = vmatpush1.bf16.msra.mxu1 %v2128_v51  ;;  %v184_v50 = vld [vmem:[#allocation5 + $0x408] sm:$0xff] }
  0xad   :  { %1589 = vmatprep.subr.bf16.mxu0 %v2151_v52  ;;  %1630 = vmatprep.subr.bf16.mxu1 %v2153_v53  ;;  %v196_v51 = vld [vmem:[#allocation5 + $0x468] sm:$0xff]  ;;  %v2130_v52 = vcombine.low %v159_v40, %v171_v41  ;;  %v2132_v53 = vcombine.low %v160_v42, %v172_v43  ;;  %v2111_v40 = vcombine.high %v137_v34, %v149_v35  ;;  %v161_v42 = vld [vmem:[#allocation5 + $0x350] sm:$0xff] }
  0xae   :  { %v2157_v55 = vcombine.high %v184_v50, %v196_v51  ;;  %v173_v43 = vld [vmem:[#allocation5 + $0x3b0] sm:$0xff] }
  0xb0   :  { %1590 = vmatpush1.bf16.msra.mxu0 %v2150_v58  ;;  %1631 = vmatpush1.bf16.msra.mxu1 %v2152_v59  ;;  %v208_v58 = vld [vmem:[#allocation5 + $0x4c8] sm:$0xff] }
  0xb1   :  { %1591 = vmatprep.subr.bf16.mxu0 %v2175_v60  ;;  %1632 = vmatprep.subr.bf16.mxu1 %v2177_v61  ;;  %v220_v59 = vld [vmem:[#allocation5 + $0x528] sm:$0xff]  ;;  %v2154_v60 = vcombine.low %v183_v48, %v195_v49  ;;  %v2156_v61 = vcombine.low %v184_v50, %v196_v51  ;;  %v2135_v48 = vcombine.high %v161_v42, %v173_v43  ;;  %v185_v49 = vld [vmem:[#allocation5 + $0x410] sm:$0xff]  ;;  %v186_v51 = vld [vmem:[#allocation5 + $0x418] sm:$0xff] }
  0xb2   :  { %v2181_v63 = vcombine.high %v208_v58, %v220_v59  ;;  %v197_v50 = vld [vmem:[#allocation5 + $0x470] sm:$0xff] }
  0xb4   :  { %1592 = vmatpush1.bf16.msra.mxu0 %v2174_v3  ;;  %1633 = vmatpush1.bf16.msra.mxu1 %v2176_v4  ;;  %v232_v3 = vld [vmem:[#allocation5 + $0x588] sm:$0xff] }
  0xb5   :  { %1593 = vmatprep.subr.bf16.mxu0 %v2199_v5  ;;  %1634 = vmatprep.subr.bf16.mxu1 %v2201_v6  ;;  %v244_v4 = vld [vmem:[#allocation5 + $0x5e8] sm:$0xff]  ;;  %v2178_v5 = vcombine.low %v207_v56, %v219_v57  ;;  %v2180_v6 = vcombine.low %v208_v58, %v220_v59  ;;  %v209_v57 = vld [vmem:[#allocation5 + $0x4d0] sm:$0xff]  ;;  %v210_v59 = vld [vmem:[#allocation5 + $0x4d8] sm:$0xff] }
  0xb6   :  { %v2205_v8 = vcombine.high %v232_v3, %v244_v4  ;;  %v221_v58 = vld [vmem:[#allocation5 + $0x530] sm:$0xff] }
  0xb8   :  { %1594 = vmatpush1.bf16.msra.mxu0 %v2198_v12  ;;  %1635 = vmatpush1.bf16.msra.mxu1 %v2200_v13  ;;  %v66_v12 = vld [vmem:[#allocation5 + $0x58] sm:$0xff] }
  0xb9   :  { %1661 = vmatprep.subr.bf16.mxu0 %v2035_v14  ;;  %1702 = vmatprep.subr.bf16.mxu1 %v2037_v15  ;;  %v78_v13 = vld [vmem:[#allocation5 + $0xb8] sm:$0xff]  ;;  %v2202_v14 = vcombine.low %v231_v1, %v243_v2  ;;  %v2204_v15 = vcombine.low %v232_v3, %v244_v4  ;;  %v233_v2 = vld [vmem:[#allocation5 + $0x590] sm:$0xff] }
  0xba   :  { %v2041_v17 = vcombine.high %v66_v12, %v78_v13  ;;  %v245_v3 = vld [vmem:[#allocation5 + $0x5f0] sm:$0xff]  ;;  %v234_v4 = vld [vmem:[#allocation5 + $0x598] sm:$0xff] }
  0xbb   :  { %1612 = vmatmul.mubr.bf16.vlgmr.msra.gmra.mrb[12].mxu0 %v2378_v11  ;;  %1653 = vmatmul.mubr.bf16.vlgmr.msra.gmra.mrb[12].mxu1 %v2378_v11 }
  0xbc   :  { %1662 = vmatpush1.bf16.msra.mxu0 %v2034_v20  ;;  %1703 = vmatpush1.bf16.msra.mxu1 %v2036_v21  ;;  %v90_v20 = vld [vmem:[#allocation5 + $0x118] sm:$0xff] }
  0xbd   :  { %1663 = vmatprep.subr.bf16.mxu0 %v2059_v22  ;;  %1704 = vmatprep.subr.bf16.mxu1 %v2061_v23  ;;  %v102_v21 = vld [vmem:[#allocation5 + $0x178] sm:$0xff]  ;;  %v2038_v22 = vcombine.low %v65_v9, %v77_v10  ;;  %v2040_v23 = vcombine.low %v66_v12, %v78_v13  ;;  %v2206_v10 = vcombine.low %v233_v2, %v245_v3  ;;  %v1213_v13 = vlaneseq }
  0xbe   :  { %1693 = vmatprep.mubr.bf16.mxu0 %v2317_v0  ;;  %1734 = vmatprep.mubr.bf16.mxu1 %v2317_v0  ;;  %v2065_v25 = vcombine.high %v90_v20, %v102_v21 }
  0xc0   :  { %1664 = vmatpush1.bf16.msra.mxu0 %v2058_v28  ;;  %1705 = vmatpush1.bf16.msra.mxu1 %v2060_v29  ;;  %v114_v28 = vld [vmem:[#allocation5 + $0x1d8] sm:$0xff] }
  0xc1   :  { %1665 = vmatprep.subr.bf16.mxu0 %v2083_v30  ;;  %1706 = vmatprep.subr.bf16.mxu1 %v2085_v31  ;;  %v126_v29 = vld [vmem:[#allocation5 + $0x238] sm:$0xff]  ;;  %v2062_v30 = vcombine.low %v89_v18, %v101_v19  ;;  %v2064_v31 = vcombine.low %v90_v20, %v102_v21  ;;  %v2318_v19 = vmov 1966171168  }
  0xc2   :  { %v2089_v33 = vcombine.high %v114_v28, %v126_v29  ;;  %v1854_v20 = vunpack.c.l.s4 %v2318_v19 }
  0xc4   :  { %1666 = vmatpush1.bf16.msra.mxu0 %v2082_v36  ;;  %1707 = vmatpush1.bf16.msra.mxu1 %v2084_v37  ;;  %v138_v36 = vld [vmem:[#allocation5 + $0x298] sm:$0xff] }
  0xc5   :  { %1667 = vmatprep.subr.bf16.mxu0 %v2107_v38  ;;  %1708 = vmatprep.subr.bf16.mxu1 %v2109_v39  ;;  %v150_v37 = vld [vmem:[#allocation5 + $0x2f8] sm:$0xff]  ;;  %v2086_v38 = vcombine.low %v113_v26, %v125_v27  ;;  %v2088_v39 = vcombine.low %v114_v28, %v126_v29 }
  0xc6   :  { %v2113_v41 = vcombine.high %v138_v36, %v150_v37 }
  0xc8   :  { %1668 = vmatpush1.bf16.msra.mxu0 %v2106_v44  ;;  %1709 = vmatpush1.bf16.msra.mxu1 %v2108_v45  ;;  %v162_v44 = vld [vmem:[#allocation5 + $0x358] sm:$0xff] }
  0xc9   :  { %1669 = vmatprep.subr.bf16.mxu0 %v2131_v46  ;;  %1710 = vmatprep.subr.bf16.mxu1 %v2133_v47  ;;  %v174_v45 = vld [vmem:[#allocation5 + $0x3b8] sm:$0xff]  ;;  %v2110_v46 = vcombine.low %v137_v34, %v149_v35  ;;  %v2112_v47 = vcombine.low %v138_v36, %v150_v37 }
  0xcc   :  { %1670 = vmatpush1.bf16.msra.mxu0 %v2130_v52  ;;  %1711 = vmatpush1.bf16.msra.mxu1 %v2132_v53  ;;  %v198_v52 = vld [vmem:[#allocation5 + $0x478] sm:$0xff]  ;;  %v2134_v53 = vcombine.low %v161_v42, %v173_v43 }
  0xcd   :  { %1671 = vmatprep.subr.bf16.mxu0 %v2155_v54  ;;  %1712 = vmatprep.subr.bf16.mxu1 %v2157_v55  ;;  %v2136_v54 = vcombine.low %v162_v44, %v174_v45  ;;  %v2159_v55 = vcombine.high %v185_v49, %v197_v50  ;;  %v2161_v56 = vcombine.high %v186_v51, %v198_v52 }
  0xd0   :  { %1672 = vmatpush1.bf16.msra.mxu0 %v2154_v60  ;;  %1713 = vmatpush1.bf16.msra.mxu1 %v2156_v61  ;;  %v222_v60 = vld [vmem:[#allocation5 + $0x538] sm:$0xff]  ;;  %v2158_v61 = vcombine.low %v185_v49, %v197_v50 }
  0xd1   :  { %1673 = vmatprep.subr.bf16.mxu0 %v2179_v62  ;;  %1714 = vmatprep.subr.bf16.mxu1 %v2181_v63  ;;  %v2160_v62 = vcombine.low %v186_v51, %v198_v52  ;;  %v2183_v63 = vcombine.high %v209_v57, %v221_v58  ;;  %v2185_v1 = vcombine.high %v210_v59, %v222_v60 }
  0xd4   :  { %1674 = vmatpush1.bf16.msra.mxu0 %v2178_v5  ;;  %1715 = vmatpush1.bf16.msra.mxu1 %v2180_v6  ;;  %v246_v5 = vld [vmem:[#allocation5 + $0x5f8] sm:$0xff]  ;;  %v2182_v6 = vcombine.low %v209_v57, %v221_v58 }
  0xd5   :  { %1675 = vmatprep.subr.bf16.mxu0 %v2203_v7  ;;  %1716 = vmatprep.subr.bf16.mxu1 %v2205_v8  ;;  %v2184_v7 = vcombine.low %v210_v59, %v222_v60  ;;  %v2207_v8 = vcombine.high %v233_v2, %v245_v3  ;;  %v2209_v9 = vcombine.high %v234_v4, %v246_v5 }
  0xd6   :  { %v2208_v12 = vcombine.low %v234_v4, %v246_v5 }
  0xd8   :  { %1676 = vmatpush1.bf16.msra.mxu0 %v2202_v14  ;;  %1717 = vmatpush1.bf16.msra.mxu1 %v2204_v15  ;;  %v1214_v14 = vshrl.u32 %v1213_v13, 7 }
  0xd9   :  { %1743 = vmatprep.subr.bf16.mxu0 %v2039_v16  ;;  %1784 = vmatprep.subr.bf16.mxu1 %v2041_v17  ;;  %v247_v16 = vld [vmem:[#allocation7] sm:$0xff] }
  0xda   :  { %v2402_v15 = vsub.s32 0, %v1214_v14  ;;  %v2404_v17 = vsub.s32 2, %v1214_v14  ;;  %v2406_v18 = vsub.s32 1, %v1214_v14  ;;  %v2408_v21 = vsub.s32 3, %v1214_v14 }
  0xdb   :  { %1694 = vmatmul.mubr.bf16.vlgmr.msra.gmra.mrb[16].mxu0 %v2378_v11  ;;  %1735 = vmatmul.mubr.bf16.vlgmr.msra.gmra.mrb[16].mxu1 %v2378_v11 }
  0xdc   :  { %1744 = vmatpush1.bf16.msra.mxu0 %v2038_v22  ;;  %1785 = vmatpush1.bf16.msra.mxu1 %v2040_v23  ;;  %v1216_v22 = vrot.slane %v247_v16, %v2402_v15  ;;  %v1224_v23 = vrot.slane %v247_v16, %v2404_v17 }
  0xdd   :  { %1745 = vmatprep.subr.bf16.mxu0 %v2063_v24  ;;  %1786 = vmatprep.subr.bf16.mxu1 %v2065_v25  ;;  %v1220_v24 = vrot.slane %v247_v16, %v2406_v18  ;;  %v1228_v25 = vrot.slane %v247_v16, %v2408_v21 }
  0xde   :  { %1775 = vmatprep.mubr.bf16.mxu0 %v2317_v0  ;;  %1816 = vmatprep.mubr.bf16.mxu1 %v2317_v0  ;;  %v2137_v0 = vcombine.high %v162_v44, %v174_v45  ;;  %v2418_v44 = vsub.s32 4, %v1214_v14  ;;  %v2420_v45 = vsub.s32 6, %v1214_v14 }
  0xe0   :  { %1746 = vmatpush1.bf16.msra.mxu0 %v2062_v30  ;;  %1787 = vmatpush1.bf16.msra.mxu1 %v2064_v31 }
  0xe1   :  { %1747 = vmatprep.subr.bf16.mxu0 %v2087_v32  ;;  %1788 = vmatprep.subr.bf16.mxu1 %v2089_v33 }
  0xe4   :  { %1748 = vmatpush1.bf16.msra.mxu0 %v2086_v38  ;;  %1789 = vmatpush1.bf16.msra.mxu1 %v2088_v39 }
  0xe5   :  { %1749 = vmatprep.subr.bf16.mxu0 %v2111_v40  ;;  %1790 = vmatprep.subr.bf16.mxu1 %v2113_v41 }
  0xe8   :  { %1750 = vmatpush1.bf16.msra.mxu0 %v2110_v46  ;;  %1791 = vmatpush1.bf16.msra.mxu1 %v2112_v47  ;;  %v2422_v46 = vsub.s32 5, %v1214_v14  ;;  %v2424_v47 = vsub.s32 7, %v1214_v14 }
  0xe9   :  { %1751 = vmatprep.subr.bf16.mxu0 %v2135_v48  ;;  %1792 = vmatprep.subr.bf16.mxu1 %v2137_v0  ;;  %v1232_v48 = vrot.slane %v247_v16, %v2418_v44  ;;  %v1240_v0 = vrot.slane %v247_v16, %v2420_v45 }
  0xea   :  { %v1236_v49 = vrot.slane %v247_v16, %v2422_v46  ;;  %v1244_v50 = vrot.slane %v247_v16, %v2424_v47 }
  0xec   :  { %1752 = vmatpush1.bf16.msra.mxu0 %v2134_v53  ;;  %1793 = vmatpush1.bf16.msra.mxu1 %v2136_v54 }
  0xed   :  { %1753 = vmatprep.subr.bf16.mxu0 %v2159_v55  ;;  %1794 = vmatprep.subr.bf16.mxu1 %v2161_v56 }
  0xf0   :  { %1754 = vmatpush1.bf16.msra.mxu0 %v2158_v61  ;;  %1795 = vmatpush1.bf16.msra.mxu1 %v2160_v62 }
  0xf1   :  { %1755 = vmatprep.subr.bf16.mxu0 %v2183_v63  ;;  %1796 = vmatprep.subr.bf16.mxu1 %v2185_v1 }
  0xf4   :  { %1756 = vmatpush1.bf16.msra.mxu0 %v2182_v6  ;;  %1797 = vmatpush1.bf16.msra.mxu1 %v2184_v7 }
  0xf5   :  { %1757 = vmatprep.subr.bf16.mxu0 %v2207_v8  ;;  %1798 = vmatprep.subr.bf16.mxu1 %v2209_v9  ;;  %v248_v8 = vld [vmem:[#allocation7 + $0x8] sm:$0xff] }
  0xf6   :  { %v1248_v9 = vrot.slane %v248_v8, %v2402_v15  ;;  %v1260_v13 = vrot.slane %v248_v8, %v2408_v21 }
  0xf8   :  { %1758 = vmatpush1.bf16.msra.mxu0 %v2206_v10  ;;  %1799 = vmatpush1.bf16.msra.mxu1 %v2208_v12  ;;  %v1256_v10 = vrot.slane %v248_v8, %v2404_v17  ;;  %v1252_v12 = vrot.slane %v248_v8, %v2406_v18 }
  0xfb   :  { %1776 = vmatmul.mubr.bf16.vlgmr.msra.gmra.mrb[20].mxu0 %v2378_v11  ;;  %1817 = vmatmul.mubr.bf16.vlgmr.msra.gmra.mrb[20].mxu1 %v2378_v11  ;;  %v1855_v11 = vunpack.c.0.s8 %v1854_v20 }
  0xfd   :  { %v2414_v32 = vsub.s32 %v1855_v11, %v1214_v14 }
 0x12e   :  { %v1367_v26 = vpop.f32.mrb[0].mxu0  ;;  %v1408_v28 = vpop.f32.mrb[0].mxu1 }
 0x12f   :  { %v1368_v27 = vadd.f32 %v1367_v26, %v1216_v22  ;;  %v1369_v29 = vpop.f32.mrb[1].mxu0  ;;  %v1409_v30 = vadd.f32 %v1408_v28, %v1224_v23  ;;  %v1410_v33 = vpop.f32.mrb[1].mxu1 }
 0x130   :  { %v1370_v31 = vadd.f32 %v1369_v29, %v1220_v24  ;;  %v1371_v34 = vpop.f32.mrb[2].mxu0  ;;  %v1411_v35 = vadd.f32 %v1410_v33, %v1228_v25  ;;  %v1412_v36 = vpop.f32.mrb[2].mxu1 }
 0x131   :  { %v1372_v37 = vpop.f32.mrb[3].mxu0  ;;  %v1413_v39 = vpop.f32.mrb[3].mxu1  ;;  %v1272_v36 = vrot.slane %v248_v8, %v2420_v45 }
 0x132   :  { %v1849_v38 = vcombine.low %v1368_v27, %v1370_v31  ;;  %v1850_v40 = vcombine.low %v1409_v30, %v1411_v35  ;;  %v1264_v35 = vrot.slane %v248_v8, %v2418_v44  ;;  %v1268_v37 = vrot.slane %v248_v8, %v2422_v46 }
 0x134   :  { %v1859_v41 = vrot.slane %v1849_v38, %v2414_v32  ;;  %v1866_v42 = vrot.slane %v1850_v40, %v2414_v32  ;;  %v1276_v38 = vrot.slane %v248_v8, %v2424_v47 }
 0x136   :  { %v1881_v43 = vcombine.low %v1859_v41, %v1866_v42 }
 0x138   :  { %v1889_v5 = vrot.slane %v1881_v43, %v2414_v32 }
 0x14e   :  { %v1449_v51 = vpop.f32.mrb[4].mxu0  ;;  %v1490_v53 = vpop.f32.mrb[4].mxu1 }
 0x14f   :  { %v1450_v52 = vadd.f32 %v1449_v51, %v1232_v48  ;;  %v1451_v54 = vpop.f32.mrb[5].mxu0  ;;  %v1491_v55 = vadd.f32 %v1490_v53, %v1240_v0  ;;  %v1492_v57 = vpop.f32.mrb[5].mxu1 }
 0x150   :  { %v1452_v56 = vadd.f32 %v1451_v54, %v1236_v49  ;;  %v1453_v58 = vpop.f32.mrb[6].mxu0  ;;  %v1493_v59 = vadd.f32 %v1492_v57, %v1244_v50  ;;  %v1494_v60 = vpop.f32.mrb[6].mxu1 }
 0x151   :  { %v1454_v61 = vpop.f32.mrb[7].mxu0  ;;  %v1495_v63 = vpop.f32.mrb[7].mxu1 }
 0x152   :  { %v1851_v62 = vcombine.low %v1450_v52, %v1452_v56  ;;  %v1852_v1 = vcombine.low %v1491_v55, %v1493_v59 }
 0x154   :  { %v1873_v2 = vrot.slane %v1851_v62, %v2414_v32  ;;  %v1880_v3 = vrot.slane %v1852_v1, %v2414_v32  ;;  %v249_v62 = vld [vmem:[#allocation7 + $0x10] sm:$0xff] }
 0x155   :  { %v1280_v63 = vrot.slane %v249_v62, %v2402_v15  ;;  %v1288_v1 = vrot.slane %v249_v62, %v2404_v17 }
 0x156   :  { %v1882_v4 = vcombine.low %v1873_v2, %v1880_v3  ;;  %v1284_v2 = vrot.slane %v249_v62, %v2406_v18  ;;  %v1292_v3 = vrot.slane %v249_v62, %v2408_v21  ;;  %v1296_v21 = vrot.slane %v249_v62, %v2418_v44 }
 0x158   :  { %v1896_v6 = vrot.slane %v1882_v4, %v2414_v32 }
 0x15a   :  { %v1897_v7 = vcombine.low %v1889_v5, %v1896_v6 }
 0x15c   :  { %1999 = vst [vmem:[#allocation8] sm:$0xff] %v1897_v7 }
 0x16e   :  { %v1531_v14 = vpop.f32.mrb[8].mxu0  ;;  %v1572_v19 = vpop.f32.mrb[8].mxu1 }
 0x16f   :  { %v1532_v16 = vadd.f32 %v1531_v14, %v1248_v9  ;;  %v1533_v20 = vpop.f32.mrb[9].mxu0  ;;  %v1573_v22 = vadd.f32 %v1572_v19, %v1256_v10  ;;  %v1574_v24 = vpop.f32.mrb[9].mxu1 }
 0x170   :  { %v1534_v23 = vadd.f32 %v1533_v20, %v1252_v12  ;;  %v1535_v11 = vpop.f32.mrb[10].mxu0  ;;  %v1575_v25 = vadd.f32 %v1574_v24, %v1260_v13  ;;  %v1576_v26 = vpop.f32.mrb[10].mxu1  ;;  %v1300_v24 = vrot.slane %v249_v62, %v2422_v46 }
 0x171   :  { %v1536_v27 = vpop.f32.mrb[11].mxu0  ;;  %v1577_v29 = vpop.f32.mrb[11].mxu1  ;;  %v1308_v11 = vrot.slane %v249_v62, %v2424_v47 }
 0x172   :  { %v1898_v28 = vcombine.low %v1532_v16, %v1534_v23  ;;  %v1899_v30 = vcombine.low %v1573_v22, %v1575_v25  ;;  %v1304_v23 = vrot.slane %v249_v62, %v2420_v45 }
 0x174   :  { %v1908_v31 = vrot.slane %v1898_v28, %v2414_v32  ;;  %v1915_v33 = vrot.slane %v1899_v30, %v2414_v32 }
 0x176   :  { %v1930_v34 = vcombine.low %v1908_v31, %v1915_v33 }
 0x178   :  { %v1938_v59 = vrot.slane %v1930_v34, %v2414_v32 }
 0x18e   :  { %v1613_v39 = vpop.f32.mrb[12].mxu0  ;;  %v1654_v41 = vpop.f32.mrb[12].mxu1 }
 0x18f   :  { %v1614_v40 = vadd.f32 %v1613_v39, %v1264_v35  ;;  %v1615_v42 = vpop.f32.mrb[13].mxu0  ;;  %v1655_v43 = vadd.f32 %v1654_v41, %v1272_v36  ;;  %v1656_v0 = vpop.f32.mrb[13].mxu1 }
 0x190   :  { %v1616_v48 = vadd.f32 %v1615_v42, %v1268_v37  ;;  %v1617_v49 = vpop.f32.mrb[14].mxu0  ;;  %v1657_v50 = vadd.f32 %v1656_v0, %v1276_v38  ;;  %v1658_v51 = vpop.f32.mrb[14].mxu1 }
 0x191   :  { %v1618_v52 = vpop.f32.mrb[15].mxu0  ;;  %v1659_v54 = vpop.f32.mrb[15].mxu1 }
 0x192   :  { %v1900_v53 = vcombine.low %v1614_v40, %v1616_v48  ;;  %v1901_v55 = vcombine.low %v1655_v43, %v1657_v50 }
 0x194   :  { %v1922_v56 = vrot.slane %v1900_v53, %v2414_v32  ;;  %v1929_v57 = vrot.slane %v1901_v55, %v2414_v32 }
 0x196   :  { %v1931_v58 = vcombine.low %v1922_v56, %v1929_v57 }
 0x198   :  { %v1945_v60 = vrot.slane %v1931_v58, %v2414_v32 }
 0x19a   :  { %v1946_v61 = vcombine.low %v1938_v59, %v1945_v60 }
 0x19c   :  { %2000 = vst [vmem:[#allocation8 + $0x8] sm:$0xff] %v1946_v61 }
 0x1ae   :  { %v1695_v4 = vpop.f32.mrb[16].mxu0  ;;  %v1736_v6 = vpop.f32.mrb[16].mxu1 }
 0x1af   :  { %v1696_v5 = vadd.f32 %v1695_v4, %v1280_v63  ;;  %v1697_v7 = vpop.f32.mrb[17].mxu0  ;;  %v1737_v8 = vadd.f32 %v1736_v6, %v1288_v1  ;;  %v1738_v10 = vpop.f32.mrb[17].mxu1 }
 0x1b0   :  { %v1698_v9 = vadd.f32 %v1697_v7, %v1284_v2  ;;  %v1699_v12 = vpop.f32.mrb[18].mxu0  ;;  %v1739_v13 = vadd.f32 %v1738_v10, %v1292_v3  ;;  %v1740_v14 = vpop.f32.mrb[18].mxu1 }
 0x1b1   :  { %v1700_v16 = vpop.f32.mrb[19].mxu0  ;;  %v1741_v20 = vpop.f32.mrb[19].mxu1 }
 0x1b2   :  { %v1947_v19 = vcombine.low %v1696_v5, %v1698_v9  ;;  %v1948_v15 = vcombine.low %v1737_v8, %v1739_v13 }
 0x1b4   :  { %v1957_v17 = vrot.slane %v1947_v19, %v2414_v32  ;;  %v1964_v18 = vrot.slane %v1948_v15, %v2414_v32 }
 0x1b6   :  { %v1979_v22 = vcombine.low %v1957_v17, %v1964_v18 }
 0x1b8   :  { %v1987_v47 = vrot.slane %v1979_v22, %v2414_v32 }
 0x1ce   :  { %v1777_v25 = vpop.f32.mrb[20].mxu0  ;;  %v1818_v27 = vpop.f32.mrb[20].mxu1 }
 0x1cf   :  { %v1778_v26 = vadd.f32 %v1777_v25, %v1296_v21  ;;  %v1779_v28 = vpop.f32.mrb[21].mxu0  ;;  %v1819_v29 = vadd.f32 %v1818_v27, %v1304_v23  ;;  %v1820_v31 = vpop.f32.mrb[21].mxu1 }
 0x1d0   :  { %v1780_v30 = vadd.f32 %v1779_v28, %v1300_v24  ;;  %v1781_v33 = vpop.f32.mrb[22].mxu0  ;;  %v1821_v34 = vadd.f32 %v1820_v31, %v1308_v11  ;;  %v1822_v35 = vpop.f32.mrb[22].mxu1 }
 0x1d1   :  { %v1782_v36 = vpop.f32.mrb[23].mxu0  ;;  %v1823_v38 = vpop.f32.mrb[23].mxu1 }
 0x1d2   :  { %v1949_v37 = vcombine.low %v1778_v26, %v1780_v30  ;;  %v1950_v44 = vcombine.low %v1819_v29, %v1821_v34 }
 0x1d4   :  { %v1971_v45 = vrot.slane %v1949_v37, %v2414_v32  ;;  %v1978_v46 = vrot.slane %v1950_v44, %v2414_v32 }
 0x1d6   :  { %v1980_v39 = vcombine.low %v1971_v45, %v1978_v46 }
 0x1d8   :  { %v1994_v40 = vrot.slane %v1980_v39, %v2414_v32 }
 0x1da   :  { %v1995_v41 = vcombine.low %v1987_v47, %v1994_v40 }
 0x1dc   :  { %2001 = vst [vmem:[#allocation8 + $0x10] sm:$0xff] %v1995_v41 }
 0x1dd   :  { %2295 = shalt.err (!%p2292_p0)
}
 0x1de   :  { %s2296_s26 = scalar_lea.hbm %s2477_s3, 384 }
 0x1df   :  { %p2297_p1 = scmp.ne.s32.totalorder %s2477_s3, %s2296_s26  ;;  %p2300_p2 = scmp.lt.u32.totalorder %s2296_s26, %s2477_s3 }
 0x1e1   :  { %p2302_p3 = pnand %p2300_p2, %p2297_p1 }
 0x1e3   :  { %2305 = shalt.err (!%p2302_p3)
}
 0x1e4   :  { %2011 = dma.vmem_to_hbm [thread:$0]  %s2009_s22, 384, %s2477_s3, [#allocation4]  }
 0x1e5   :  { %2310 = dma.done.wait [#allocation4], 384  }
 0x1e6   :  { %2311 = vsyncadd [#allocation4], 4294966912 }
 0x1e7   :  { %2015 = vsyncpa [#allocation3], 1 }
 0x1e8   :  { %2016 = vsyncpa [#allocation6], 1 }
 0x1e9   :  { %2017 = vsyncpa [#allocation4], 1 }

</bundles_post_ra>
